<compile_context>
chip_gen: v5e
topology: v5e:2x2
jax: 0.10.0
libtpu: 0.0.40
codegen_flags: <defaults>
</compile_context>

<pallas_src>
import math

import jax
import jax.numpy as jnp
from jax.experimental import pallas as pl
from jax.experimental.pallas import tpu as pltpu

_LANE = 128


def _sublane_pack(dtype) -> int:
    # Rows per packed sublane group: 8 for 4-byte, 16 for 2-byte, 32 for 1-byte.
    return max(8, 32 // max(jnp.dtype(dtype).itemsize, 1))


def _vmem_budget():
    """Returns (block_budget_bytes, vmem_limit_bytes) for the local TPU."""
    try:
        cap = int(pltpu.get_tpu_info().vmem_capacity_bytes)
    except Exception:
        cap = 64 * 1024 * 1024  # conservative: v7x physical VMEM
    block_budget = min(cap // 3, 40 * 1024 * 1024)
    vmem_limit = max(
        32 * 1024 * 1024,
        min(cap - 16 * 1024 * 1024, block_budget + 16 * 1024 * 1024),
    )
    return block_budget, int(vmem_limit)


def _col_concat_kernel(*refs):
    # Each input occupies a contiguous, statically known column range.
    n = len(refs) - 1
    out_ref = refs[n]
    off = 0
    for r in refs[:n]:
        w = r.shape[1]
        out_ref[:, off:off + w] = r[...]
        off += w


def _row_concat_kernel(*refs):
    # Each input occupies a contiguous, statically known row range.
    n = len(refs) - 1
    out_ref = refs[n]
    off = 0
    for r in refs[:n]:
        h = r.shape[0]
        out_ref[off:off + h, :] = r[...]
        off += h


def concatenate(xs, dim, *, max_tile_rows=None):
    """Pallas equivalent of torch.cat(xs, dim=dim)."""
    assert len(xs) >= 1
    ndim = xs[0].ndim
    dim = dim % ndim
    dtype = xs[0].dtype
    for x in xs:
        assert x.ndim == ndim and x.dtype == dtype
        for a in range(ndim):
            if a != dim:
                assert x.shape[a] == xs[0].shape[a]

    lead = xs[0].shape[:dim]
    trail = xs[0].shape[dim + 1:]
    outer = int(math.prod(lead)) if lead else 1
    inner = int(math.prod(trail)) if trail else 1
    itemsize = jnp.dtype(dtype).itemsize
    out_shape_nd = lead + (sum(x.shape[dim] for x in xs),) + trail

    block_budget, vmem_limit = _vmem_budget()
    total_bytes = sum(int(x.size) for x in xs) * itemsize
    cost = pl.CostEstimate(flops=0, transcendentals=0,
                           bytes_accessed=2 * total_bytes)
    cparams = pltpu.CompilerParams(dimension_semantics=("parallel",),
                                   vmem_limit_bytes=vmem_limit)

    if outer == 1 and inner > 1:
        # Leading-axis concat: (rows_i, inner) views, concat along rows;
        # tile along the (lane-dense) column axis.
        xs2d = [x.reshape(x.shape[dim], inner) for x in xs]
        heights = [v.shape[0] for v in xs2d]
        total_h = sum(heights)
        per_col = 2 * 2 * total_h * itemsize  # double-buffered inputs + output
        if per_col * min(inner, _LANE) > vmem_limit:
            # TODO(synk): columns too tall to tile along `inner` alone.
            return jnp.concatenate(xs, axis=dim)
        tc = block_budget // per_col
        if tc >= inner:
            tc = inner
        else:
            tc = max(_LANE, (tc // _LANE) * _LANE)
        grid = (pl.cdiv(inner, tc),)
        in_specs = [pl.BlockSpec((h, tc), lambda j: (0, j)) for h in heights]
        out_spec = pl.BlockSpec((total_h, tc), lambda j: (0, j))
        out2d = pl.pallas_call(
            _row_concat_kernel,
            out_shape=jax.ShapeDtypeStruct((total_h, inner), dtype),
            grid=grid,
            in_specs=in_specs,
            out_specs=out_spec,
            compiler_params=cparams,
            cost_estimate=cost,
        )(*xs2d)
        return out2d.reshape(out_shape_nd)

    # General case: (outer, size_dim_i * inner) views, concat along columns;
    # tile along the row (outer) axis for pipelining.
    xs2d = [x.reshape(outer, x.shape[dim] * inner) for x in xs]
    widths = [v.shape[1] for v in xs2d]
    total_w = sum(widths)
    pack = _sublane_pack(dtype)
    per_row = 2 * 2 * total_w * itemsize  # double-buffered inputs + output
    if per_row * min(outer, pack) > vmem_limit:
        # TODO(synk): rows too wide to tile along `outer` alone.
        return jnp.concatenate(xs, axis=dim)
    tm = block_budget // per_row
    tm = min(tm, 1024)
    if max_tile_rows is not None:
        tm = min(tm, max_tile_rows)
    if tm >= outer:
        tm = outer
    else:
        tm = max(pack, (tm // pack) * pack)
    grid = (pl.cdiv(outer, tm),)
    in_specs = [pl.BlockSpec((tm, w), lambda i: (i, 0)) for w in widths]
    out_spec = pl.BlockSpec((tm, total_w), lambda i: (i, 0))
    out2d = pl.pallas_call(
        _col_concat_kernel,
        out_shape=jax.ShapeDtypeStruct((outer, total_w), dtype),
        grid=grid,
        in_specs=in_specs,
        out_specs=out_spec,
        compiler_params=cparams,
        cost_estimate=cost,
    )(*xs2d)
    return out2d.reshape(out_shape_nd)


if __name__ == "__main__":
    key = jax.random.PRNGKey(0)
    k1, k2, k3 = jax.random.split(key, 3)

    # NCHW-style inputs, concatenated along the channel axis (dim=1).
    x0 = jax.random.normal(k1, (2, 4, 16, 16), dtype=jnp.float32)
    x1 = jax.random.normal(k2, (2, 3, 16, 16), dtype=jnp.float32)
    x2 = jax.random.normal(k3, (2, 5, 16, 16), dtype=jnp.float32)

    out = jax.block_until_ready(concatenate([x0, x1, x2], dim=1))
    ref = jnp.concatenate([x0, x1, x2], axis=1)
    assert out.shape == ref.shape == (2, 12, 16, 16)
    assert jnp.array_equal(out, ref)

    # Last axis (non-128-aligned column widths; masked stores but correct).
    out_last = jax.block_until_ready(concatenate([x0, x0], dim=-1))
    assert jnp.array_equal(out_last, jnp.concatenate([x0, x0], axis=-1))

    # Leading axis (dim=0) -> row-block (lane-dense) path.
    x3 = jax.random.normal(k3, (3, 4, 16, 16), dtype=jnp.float32)
    out0 = jax.block_until_ready(concatenate([x0, x3], dim=0))
    assert jnp.array_equal(out0, jnp.concatenate([x0, x3], axis=0))

    # Multi-tile pipelined grid (force small row tiles), incl. a ragged tail.
    out_t = jax.block_until_ready(concatenate([x0, x0], dim=-1, max_tile_rows=8))
    assert jnp.array_equal(out_t, jnp.concatenate([x0, x0], axis=-1))
    out_r = jax.block_until_ready(concatenate([x0, x0], dim=-1, max_tile_rows=48))
    assert jnp.array_equal(out_r, jnp.concatenate([x0, x0], axis=-1))

    # 1-D concat.
    a = jnp.arange(8, dtype=jnp.float32)
    b = jnp.arange(5, dtype=jnp.float32) + 100.0
    out1 = jax.block_until_ready(concatenate([a, b], dim=0))
    assert jnp.array_equal(out1, jnp.concatenate([a, b], axis=0))

    print("KERNEL_OK")
</pallas_src>

<mosaic_0001>
module attributes {stable_mosaic.version = 11 : i64} {
  func.func @_col_concat_kernel(%arg0: i32, %arg1: memref<2x1024xf32, #tpu.memory_space<vmem>>, %arg2: memref<2x768xf32, #tpu.memory_space<vmem>>, %arg3: memref<2x1280xf32, #tpu.memory_space<vmem>>, %arg4: memref<2x3072xf32, #tpu.memory_space<vmem>>) attributes {dimension_semantics = [#tpu.dimension_semantics<parallel>], iteration_bounds = array<i64: 1>, scalar_prefetch = 0 : i64, scratch_operands = 0 : i64, tpu.core_type = #tpu.core_type<tc>, window_params = [{transform_indices = @transform_0, window_bounds = array<i64: 2, 1024>}, {transform_indices = @transform_1, window_bounds = array<i64: 2, 768>}, {transform_indices = @transform_2, window_bounds = array<i64: 2, 1280>}, {transform_indices = @transform_3, window_bounds = array<i64: 2, 3072>}]} {
    %c0 = arith.constant 0 : index
    %c0_0 = arith.constant 0 : index
    %0 = vector.load %arg1[%c0, %c0_0] : memref<2x1024xf32, #tpu.memory_space<vmem>>, vector<2x1024xf32>
    %c0_1 = arith.constant 0 : index
    %c0_2 = arith.constant 0 : index
    %1 = vector.load %arg4[%c0_1, %c0_2] : memref<2x3072xf32, #tpu.memory_space<vmem>>, vector<2x1024xf32>
    tpu.vector_store %arg4[%c0_1, %c0_2], %0 {strides = array<i32>} : memref<2x3072xf32, #tpu.memory_space<vmem>>, vector<2x1024xf32>,
    %c0_3 = arith.constant 0 : index
    %c0_4 = arith.constant 0 : index
    %2 = vector.load %arg2[%c0_3, %c0_4] : memref<2x768xf32, #tpu.memory_space<vmem>>, vector<2x768xf32>
    %c0_5 = arith.constant 0 : index
    %c1024 = arith.constant 1024 : index
    %3 = vector.load %arg4[%c0_5, %c1024] : memref<2x3072xf32, #tpu.memory_space<vmem>>, vector<2x768xf32>
    tpu.vector_store %arg4[%c0_5, %c1024], %2 {strides = array<i32>} : memref<2x3072xf32, #tpu.memory_space<vmem>>, vector<2x768xf32>,
    %c0_6 = arith.constant 0 : index
    %c0_7 = arith.constant 0 : index
    %4 = vector.load %arg3[%c0_6, %c0_7] : memref<2x1280xf32, #tpu.memory_space<vmem>>, vector<2x1280xf32>
    %c0_8 = arith.constant 0 : index
    %c1792 = arith.constant 1792 : index
    %5 = vector.load %arg4[%c0_8, %c1792] : memref<2x3072xf32, #tpu.memory_space<vmem>>, vector<2x1280xf32>
    tpu.vector_store %arg4[%c0_8, %c1792], %4 {strides = array<i32>} : memref<2x3072xf32, #tpu.memory_space<vmem>>, vector<2x1280xf32>,
    return
  }
  func.func @transform_0(%arg0: i32) -> (i32, i32) {
    %c0_i32 = arith.constant 0 : i32
    %c0_i32_0 = arith.constant 0 : i32
    return %arg0, %c0_i32 : i32, i32
  }
  func.func @transform_1(%arg0: i32) -> (i32, i32) {
    %c0_i32 = arith.constant 0 : i32
    %c0_i32_0 = arith.constant 0 : i32
    return %arg0, %c0_i32 : i32, i32
  }
  func.func @transform_2(%arg0: i32) -> (i32, i32) {
    %c0_i32 = arith.constant 0 : i32
    %c0_i32_0 = arith.constant 0 : i32
    return %arg0, %c0_i32 : i32, i32
  }
  func.func @transform_3(%arg0: i32) -> (i32, i32) {
    %c0_i32 = arith.constant 0 : i32
    %c0_i32_0 = arith.constant 0 : i32
    return %arg0, %c0_i32 : i32, i32
  }
}

</mosaic_0001>

<bundles_post_ra>
// kernel: tpu_custom_call.1
= control target key start
LH: loop header
LB: loop body
LE: loop exit
PB: predicated region body
PF: predicated region fallthrough
CT: control target
= control target key end

     0   :  { %8 = vsyncpa [#allocation3], 0  ;;  %s230_s0 = inlined_call_operand.hbm [shape: f32[2,1024], index: 0, kind: input, shape index: {}]   ;;  %s231_s1 = inlined_call_operand.hbm [shape: f32[2,768], index: 1, kind: input, shape index: {}]   ;;  %s232_s2 = inlined_call_operand.hbm [shape: f32[2,1280], index: 2, kind: input, shape index: {}]   ;;  %s233_s3 = inlined_call_operand.hbm [shape: f32[2,3072], index: 3, kind: output, shape index: {}]  }
   0x1   :  { %9 = vsyncpa [#allocation6], 0  ;;  %s27_s14 = sshll.u32 %s231_s1, 4  ;;  %s28_s14 = int_to_ptr.hbm [resolvable:$true] %s27_s14 }
   0x2   :  { %10 = vsyncpa [#allocation4], 0  ;;  %s194_s15 = smov [#allocation5]   ;;  %s16_s19 = sshll.u32 %s230_s0, 4  ;;  %s17_s19 = int_to_ptr.hbm [resolvable:$true] %s16_s19 }
   0x3   :  { %s29_s16 = sshll.u32 %s194_s15, 4  ;;  %s195_s20 = smov [#allocation2]   ;;  %s30_s16 = int_to_ptr.vmem [resolvable:$true] %s29_s16 }
   0x4   :  { %32 = dma.hbm_to_vmem [thread:$0]  %s28_s14, 192, %s30_s16, [#allocation6]  }
   0x5   :  { %s18_s21 = sshll.u32 %s195_s20, 4  ;;  %s38_s24 = sshll.u32 %s232_s2, 4  ;;  %s19_s21 = int_to_ptr.vmem [resolvable:$true] %s18_s21  ;;  %s39_s24 = int_to_ptr.hbm [resolvable:$true] %s38_s24 }
   0x6   :  { %21 = dma.hbm_to_vmem [thread:$0]  %s17_s19, 256, %s19_s21, [#allocation3]  }
   0x7   :  { %s196_s1 = smov [#allocation7]  }
   0x8   :  { %s40_s25 = sshll.u32 %s196_s1, 4  ;;  %s41_s25 = int_to_ptr.vmem [resolvable:$true] %s40_s25 }
   0x9   :  { %43 = dma.hbm_to_vmem [thread:$0]  %s39_s24, 320, %s41_s25, [#allocation6]  }
   0xa   :  { %188 = dma.done.wait [#allocation3], 256  }
   0xb   :  { %189 = vsyncadd [#allocation3], 4294967040 }
   0xc   :  { %190 = dma.done.wait [#allocation6], 512  }
   0xd   :  { %191 = vsyncadd [#allocation6], 4294966784  ;;  %v56_v0 = vld [vmem:[#allocation2] sm:$0xff]  ;;  %v57_v1 = vld [vmem:[#allocation2 + $0x8] sm:$0xff]  ;;  %s197_s0 = smov [#allocation8]   ;;  %s77_s28 = sshll.u32 %s233_s3, 4  ;;  %s78_s28 = int_to_ptr.hbm [resolvable:$true] %s77_s28 }
   0xe   :  { %v60_v2 = vld [vmem:[#allocation5] sm:$0xff]  ;;  %58 = vst [vmem:[#allocation8] sm:$0xff] %v56_v0  ;;  %v61_v3 = vld [vmem:[#allocation5 + $0x8] sm:$0xf]  ;;  %v64_v4 = vld [vmem:[#allocation7] sm:$0xff]  ;;  %s75_s2 = sshll.u32 %s197_s0, 4  ;;  %s76_s2 = int_to_ptr.vmem [resolvable:$true] %s75_s2 }
   0xf   :  { %59 = vst [vmem:[#allocation8 + $0x8] sm:$0xff] %v57_v1  ;;  %v65_v5 = vld [vmem:[#allocation7 + $0x8] sm:$0xff]  ;;  %v66_v6 = vld [vmem:[#allocation7 + $0x10] sm:$0xf] }
  0x10   :  { %62 = vst [vmem:[#allocation8 + $0x10] sm:$0xff] %v60_v2 }
  0x11   :  { %63 = vst [vmem:[#allocation8 + $0x18] sm:$0xf] %v61_v3 }
  0x12   :  { %67 = vst [vmem:[#allocation8 + $0x1c] sm:$0xff] %v64_v4 }
  0x13   :  { %68 = vst [vmem:[#allocation8 + $0x24] sm:$0xff] %v65_v5 }
  0x14   :  { %69 = vst [vmem:[#allocation8 + $0x2c] sm:$0xf] %v66_v6 }
  0x15   :  { %80 = dma.vmem_to_hbm [thread:$0]  %s76_s2, 768, %s78_s28, [#allocation4]  }
  0x16   :  { %192 = dma.done.wait [#allocation4], 768  }
  0x17   :  { %193 = vsyncadd [#allocation4], 4294966528 }
  0x18   :  { %85 = vsyncpa [#allocation3], 1 }
  0x19   :  { %86 = vsyncpa [#allocation6], 1 }
  0x1a   :  { %87 = vsyncpa [#allocation4], 1 }

</bundles_post_ra>
